<compile_context>
chip_gen: v5e
topology: v5e:2x2
jax: 0.10.0
libtpu: 0.0.40
codegen_flags: <defaults>
</compile_context>

<pallas_src>
import functools
import math

import jax
import jax.numpy as jnp
from jax import lax
from jax.experimental import pallas as pl
from jax.experimental.pallas import tpu as pltpu

_VMEM_LIMIT = 32 * 1024 * 1024  # safe on v5e / v6e / v7x


def _pick_tile(dim, target):
    """Tile that evenly divides `dim`: `target` if possible, else the full dim.

    Keeps every block's last-two dims either (8,128)-aligned or equal to the
    full array dims (TPU layout rule); small test shapes fall back to full dims."""
    return target if dim % target == 0 else dim


# ----------------------------- Tiled linear kernel ------------------------------ #
@functools.lru_cache(maxsize=None)
def _build_linear(n_rows, d_in, d_out, out_dtype_name, tm=256, tn=256):
    out_dtype = jnp.dtype(out_dtype_name)
    bm = _pick_tile(n_rows, tm)
    bn = _pick_tile(d_out, tn)

    def kernel(x_ref, w_ref, b_ref, o_ref):
        acc = jnp.dot(x_ref[...], w_ref[...], preferred_element_type=jnp.float32)
        o_ref[...] = (acc + b_ref[...]).astype(o_ref.dtype)

    return pl.pallas_call(
        kernel,
        out_shape=jax.ShapeDtypeStruct((n_rows, d_out), out_dtype),
        grid=(n_rows // bm, d_out // bn),
        in_specs=[
            pl.BlockSpec((bm, d_in), lambda i, j: (i, 0)),
            pl.BlockSpec((d_in, bn), lambda i, j: (0, j)),
            pl.BlockSpec((1, bn), lambda i, j: (0, j)),
        ],
        out_specs=pl.BlockSpec((bm, bn), lambda i, j: (i, j)),
        compiler_params=pltpu.CompilerParams(
            dimension_semantics=("parallel", "parallel"),
            vmem_limit_bytes=_VMEM_LIMIT,
        ),
    )


def pallas_linear(x, w_t, b2d, out_dtype):
    """y = x @ w_t + b.  w_t is already (Din, Dout); b2d is (1, Dout) float32."""
    n, _ = x.shape
    d_in, d_out = w_t.shape
    fn = _build_linear(n, d_in, d_out, jnp.dtype(out_dtype).name)
    return fn(x, w_t, b2d)


# ------------------------------- Attention kernel -------------------------------- #
@functools.lru_cache(maxsize=None)
def _build_attention(bsz, heads, t_len, s_len, head_dim, has_bias, need_weights,
                     compute_dtype_name):
    compute_dtype = jnp.dtype(compute_dtype_name)
    inv_heads = 1.0 / heads

    def kernel(*refs):
        qkv_ref = refs[0]
        pos = 1
        bias_ref = None
        if has_bias:
            bias_ref = refs[pos]
            pos += 1
        o_ref = refs[pos]
        w_ref = refs[pos + 1] if need_weights else None

        q = qkv_ref[0, 0, 0]                       # (T, Hd) bf16, scaling pre-folded
        k = qkv_ref[1, 0, 0]                       # (S, Hd) bf16
        v = qkv_ref[2, 0, 0]                       # (S, Hd) bf16
        # contract last dims -> MXU consumes k in its native (S, Hd) layout
        s = lax.dot_general(q, k, (((1,), (1,)), ((), ())),
                            preferred_element_type=jnp.float32)       # (T, S) f32
        if has_bias:
            s = s + bias_ref[0, 0]
        # float32 softmax (fairseq utils.softmax)
        m = jnp.max(s, axis=-1, keepdims=True)
        p = jnp.exp(s - m)
        l = jnp.sum(p, axis=-1, keepdims=True)

        if need_weights:
            probs = p * pl.reciprocal(l, approx=False)   # exact: weights match reference
            o_ref[0, 0] = jnp.dot(probs.astype(v.dtype), v,
                                  preferred_element_type=jnp.float32).astype(o_ref.dtype)

            # head-mean accumulated in-kernel into the per-batch (T, S) block
            @pl.when(pl.program_id(1) == 0)
            def _init():
                w_ref[...] = jnp.zeros_like(w_ref)

            w_ref[0] += probs * inv_heads
        else:
            o = jnp.dot(p.astype(v.dtype), v, preferred_element_type=jnp.float32)
            o_ref[0, 0] = (o * pl.reciprocal(l, approx=True)).astype(o_ref.dtype)

    in_specs = [
        pl.BlockSpec((3, 1, 1, t_len, head_dim), lambda b, h: (0, b, h, 0, 0)),
    ]
    if has_bias:
        in_specs.append(pl.BlockSpec((1, 1, t_len, s_len), lambda b, h: (b, h, 0, 0)))

    o_shape = jax.ShapeDtypeStruct((bsz, heads, t_len, head_dim), compute_dtype)
    o_spec = pl.BlockSpec((1, 1, t_len, head_dim), lambda b, h: (b, h, 0, 0))
    if need_weights:
        out_shape = (o_shape, jax.ShapeDtypeStruct((bsz, t_len, s_len), jnp.float32))
        out_specs = (o_spec, pl.BlockSpec((1, t_len, s_len), lambda b, h: (b, 0, 0)))
        dims = ("parallel", "arbitrary")   # weights block is revisited across heads
    else:
        out_shape = o_shape
        out_specs = o_spec
        dims = ("parallel", "parallel")

    return pl.pallas_call(
        kernel,
        out_shape=out_shape,
        grid=(bsz, heads),
        in_specs=in_specs,
        out_specs=out_specs,
        compiler_params=pltpu.CompilerParams(
            dimension_semantics=dims, vmem_limit_bytes=_VMEM_LIMIT),
    )


def pallas_attention(qkv, attn_bias, need_weights):
    """qkv: (3, B, H, T, Hd) with q pre-scaled; attn_bias: (B, H, T, S) f32 or None."""
    _, bsz, heads, t_len, head_dim = qkv.shape
    s_len = t_len
    fn = _build_attention(bsz, heads, t_len, s_len, head_dim,
                          attn_bias is not None, need_weights,
                          jnp.dtype(qkv.dtype).name)
    args = (qkv,) if attn_bias is None else (qkv, attn_bias)
    if need_weights:
        attn, weights = fn(*args)
        return attn, weights
    return fn(*args), None


# --------------------------------- Module wrapper --------------------------------- #
class MultiheadAttentionPallas:
    """fairseq MultiheadAttention forward (self_attention=True, dropout=0.0,
    key_padding_mask=None, attn_mask=None)."""

    def __init__(self, embed_dim, num_heads, key, compute_dtype=jnp.bfloat16):
        self.embed_dim = embed_dim
        self.num_heads = num_heads
        self.head_dim = embed_dim // num_heads
        assert self.head_dim * num_heads == embed_dim
        self.scaling = self.head_dim ** (-0.5)
        self.compute_dtype = jnp.dtype(compute_dtype)

        def xavier_uniform(k, shape, gain=1.0):
            fan_in, fan_out = shape[1], shape[0]
            bound = gain * math.sqrt(6.0 / (fan_in + fan_out))
            return jax.random.uniform(k, shape, jnp.float32, -bound, bound)

        ks = jax.random.split(key, 8)
        g = 1.0 / math.sqrt(2.0)
        E = embed_dim
        # reset_parameters(): q/k/v xavier(gain=1/sqrt(2)), out xavier(gain=1), out bias 0
        self.q_w = xavier_uniform(ks[0], (E, E), g)
        self.k_w = xavier_uniform(ks[1], (E, E), g)
        self.v_w = xavier_uniform(ks[2], (E, E), g)
        self.o_w = xavier_uniform(ks[3], (E, E), 1.0)
        bb = 1.0 / math.sqrt(E)   # nn.Linear default bias init
        self.q_b = jax.random.uniform(ks[4], (E,), jnp.float32, -bb, bb)
        self.k_b = jax.random.uniform(ks[5], (E,), jnp.float32, -bb, bb)
        self.v_b = jax.random.uniform(ks[6], (E,), jnp.float32, -bb, bb)
        self.o_b = jnp.zeros((E,), jnp.float32)

        # ---- pre-fused / pre-transposed compute copies (built once, not per call) ----
        # scaling folded into q:  (x @ Wq^T + bq) * s == x @ (s*Wq)^T + s*bq
        w_qkv = jnp.concatenate(
            [self.q_w * self.scaling, self.k_w, self.v_w], axis=0)     # (3E, E)
        b_qkv = jnp.concatenate(
            [self.q_b * self.scaling, self.k_b, self.v_b], axis=0)     # (3E,)
        self.wt_qkv = w_qkv.T.astype(self.compute_dtype)               # (E, 3E), no per-call .T
        self.b_qkv = b_qkv.astype(jnp.float32).reshape(1, 3 * E)
        self.wt_out = self.o_w.T.astype(self.compute_dtype)            # (E, E)
        self.b_out = self.o_b.reshape(1, E)

    def __call__(self, query, attn_bias, need_weights=True):
        """query: (T, B, E) f32; attn_bias: (B*H, T, T) f32 or None.
        Returns (attn (T,B,E) f32, attn_weights (B,T,T) f32 or None)."""
        T, B, E = query.shape
        H, Hd = self.num_heads, self.head_dim
        S = T  # self-attention

        x = query.reshape(T * B, E).astype(self.compute_dtype)
        qkv = pallas_linear(x, self.wt_qkv, self.b_qkv, self.compute_dtype)  # (T*B, 3E)

        # One fused relayout (instead of 3 per-projection transposes):
        #   (T*B, 3E) -> (3, B, H, T, Hd)
        # TODO(synk): folding this into the attention index_map needs per-head blocks
        # over a fused last dim, which violates the 128-lane block rule for head_dim<128.
        qkv = qkv.reshape(T, B, 3, H, Hd).transpose(2, 1, 3, 0, 4)

        bias = None
        if attn_bias is not None:
            bias = attn_bias.reshape(B, H, T, S).astype(jnp.float32)

        attn_h, weights = pallas_attention(qkv, bias, need_weights)  # (B,H,T,Hd), (B,T,S)

        attn = attn_h.transpose(2, 0, 1, 3).reshape(T * B, E)        # bf16 relayout
        out = pallas_linear(attn, self.wt_out, self.b_out, jnp.float32).reshape(T, B, E)
        return out, weights


# ------------------------------ Pure-JAX reference -------------------------------- #
def reference_forward(mha, query, attn_bias):
    """Mirrors the kernel numerics (bf16 MXU inputs, f32 accumulation/softmax)."""
    T, B, E = query.shape
    H, Hd = mha.num_heads, mha.head_dim
    cdt = mha.compute_dtype
    x = query.reshape(T * B, E).astype(cdt)
    qkv = (jnp.dot(x, mha.wt_qkv, preferred_element_type=jnp.float32)
           + mha.b_qkv).astype(cdt)
    qkv = qkv.reshape(T, B, 3, H, Hd).transpose(2, 1, 3, 0, 4)
    qh, kh, vh = qkv[0], qkv[1], qkv[2]                       # (B, H, T, Hd)
    s = jnp.einsum("bhtd,bhsd->bhts", qh, kh,
                   preferred_element_type=jnp.float32)
    if attn_bias is not None:
        s = s + attn_bias.reshape(B, H, T, T).astype(jnp.float32)
    p = jax.nn.softmax(s, axis=-1)
    a = jnp.einsum("bhts,bhsd->bhtd", p.astype(cdt), vh,
                   preferred_element_type=jnp.float32).astype(cdt)
    a = a.transpose(2, 0, 1, 3).reshape(T * B, E)
    out = (jnp.dot(a, mha.wt_out, preferred_element_type=jnp.float32)
           + mha.b_out).reshape(T, B, E)
    return out, p.mean(axis=1)


if __name__ == "__main__":
    key = jax.random.PRNGKey(0)
    k_param, k_q, k_bias = jax.random.split(key, 3)

    tgt_len, bsz, embed_dim, num_heads = 8, 2, 32, 4
    mha = MultiheadAttentionPallas(embed_dim, num_heads, k_param)

    query = jax.random.normal(k_q, (tgt_len, bsz, embed_dim), jnp.float32)
    attn_bias = 0.1 * jax.random.normal(
        k_bias, (bsz * num_heads, tgt_len, tgt_len), jnp.float32)

    # 1) attn_bias + need_weights=True (the default PyTorch path)
    out, weights = mha(query, attn_bias, need_weights=True)
    out = jax.block_until_ready(out)
    weights = jax.block_until_ready(weights)
    ref_out, ref_w = reference_forward(mha, query, attn_bias)
    assert out.shape == (tgt_len, bsz, embed_dim)
    assert weights.shape == (bsz, tgt_len, tgt_len)
    assert jnp.allclose(out, ref_out, atol=5e-3, rtol=5e-3)
    assert jnp.allclose(weights, ref_w, atol=2e-3, rtol=2e-3)

    # 2) attn_bias=None path (no zeros tensor materialized / DMA'd)
    out_nb, w_nb = mha(query, None, need_weights=True)
    out_nb = jax.block_until_ready(out_nb)
    ref_out_nb, ref_w_nb = reference_forward(mha, query, None)
    assert jnp.allclose(out_nb, ref_out_nb, atol=5e-3, rtol=5e-3)
    assert jnp.allclose(w_nb, ref_w_nb, atol=2e-3, rtol=2e-3)

    # 3) need_weights=False path (no weights output, approx reciprocal)
    out_nw, w_nw = mha(query, attn_bias, need_weights=False)
    out_nw = jax.block_until_ready(out_nw)
    assert w_nw is None
    assert jnp.allclose(out_nw, out, atol=2e-2, rtol=2e-2)

    print("KERNEL_OK")
</pallas_src>

<mosaic_0001>
module attributes {stable_mosaic.version = 11 : i64} {
  func.func @kernel(%arg0: i32, %arg1: i32, %arg2: memref<16x32xbf16, #tpu.memory_space<vmem>>, %arg3: memref<32x96xbf16, #tpu.memory_space<vmem>>, %arg4: memref<1x96xf32, #tpu.memory_space<vmem>>, %arg5: memref<16x96xbf16, #tpu.memory_space<vmem>>) attributes {dimension_semantics = [#tpu.dimension_semantics<parallel>, #tpu.dimension_semantics<parallel>], iteration_bounds = array<i64: 1, 1>, scalar_prefetch = 0 : i64, scratch_operands = 0 : i64, tpu.core_type = #tpu.core_type<tc>, window_params = [{transform_indices = @transform_0, window_bounds = array<i64: 16, 32>}, {transform_indices = @transform_1, window_bounds = array<i64: 32, 96>}, {transform_indices = @transform_2, window_bounds = array<i64: 1, 96>}, {transform_indices = @transform_3, window_bounds = array<i64: 16, 96>}]} {
    %c0 = arith.constant 0 : index
    %c0_0 = arith.constant 0 : index
    %0 = vector.load %arg2[%c0, %c0_0] : memref<16x32xbf16, #tpu.memory_space<vmem>>, vector<16x32xbf16>
    %c0_1 = arith.constant 0 : index
    %c0_2 = arith.constant 0 : index
    %1 = vector.load %arg3[%c0_1, %c0_2] : memref<32x96xbf16, #tpu.memory_space<vmem>>, vector<32x96xbf16>
    %cst = arith.constant dense<0.000000e+00> : vector<16x96xf32>
    %2 = tpu.matmul %0, %1, %cst {dimension_numbers = #tpu.dot_dimension_numbers<[1], [0], [0], [1], [0, 0, 1, 1], [], []>} : vector<16x32xbf16>, vector<32x96xbf16>, vector<16x96xf32> -> vector<16x96xf32>
    %c0_3 = arith.constant 0 : index
    %c0_4 = arith.constant 0 : index
    %3 = vector.load %arg4[%c0_3, %c0_4] : memref<1x96xf32, #tpu.memory_space<vmem>>, vector<1x96xf32>
    %4 = vector.broadcast %3 : vector<1x96xf32> to vector<16x96xf32>
    %5 = arith.addf %2, %4 : vector<16x96xf32>
    %6 = arith.truncf %5 : vector<16x96xf32> to vector<16x96xbf16>
    %c0_5 = arith.constant 0 : index
    %c0_6 = arith.constant 0 : index
    %7 = vector.load %arg5[%c0_5, %c0_6] : memref<16x96xbf16, #tpu.memory_space<vmem>>, vector<16x96xbf16>
    tpu.vector_store %arg5[%c0_5, %c0_6], %6 {strides = array<i32>} : memref<16x96xbf16, #tpu.memory_space<vmem>>, vector<16x96xbf16>,
    return
  }
  func.func @transform_0(%arg0: i32, %arg1: i32) -> (i32, i32) {
    %c0_i32 = arith.constant 0 : i32
    %c0_i32_0 = arith.constant 0 : i32
    return %arg0, %c0_i32 : i32, i32
  }
  func.func @transform_1(%arg0: i32, %arg1: i32) -> (i32, i32) {
    %c0_i32 = arith.constant 0 : i32
    %c0_i32_0 = arith.constant 0 : i32
    return %c0_i32, %arg1 : i32, i32
  }
  func.func @transform_2(%arg0: i32, %arg1: i32) -> (i32, i32) {
    %c0_i32 = arith.constant 0 : i32
    %c0_i32_0 = arith.constant 0 : i32
    return %c0_i32, %arg1 : i32, i32
  }
  func.func @transform_3(%arg0: i32, %arg1: i32) -> (i32, i32) {
    %c0_i32 = arith.constant 0 : i32
    return %arg0, %arg1 : i32, i32
  }
}

</mosaic_0001>

<bundles_post_ra>
// kernel: tpu_custom_call.1
= control target key start
LH: loop header
LB: loop body
LE: loop exit
PB: predicated region body
PF: predicated region fallthrough
CT: control target
= control target key end

     0   :  { %8 = vsyncpa [#allocation3], 0  ;;  %s264_s0 = inlined_call_operand.hbm [shape: bf16[16,32], index: 0, kind: input, shape index: {}]   ;;  %s265_s1 = inlined_call_operand.hbm [shape: bf16[32,96], index: 1, kind: input, shape index: {}]   ;;  %s266_s2 = inlined_call_operand.vmem [shape: f32[1,96], index: 2, kind: input, shape index: {}]   ;;  %s267_s3 = inlined_call_operand.hbm [shape: bf16[16,96], index: 3, kind: output, shape index: {}]  }
   0x1   :  { %9 = vsyncpa [#allocation6], 0 }
   0x2   :  { %10 = vsyncpa [#allocation4], 0  ;;  %s15_s14 = sshll.u32 %s264_s0, 4  ;;  %s218_s15 = smov [#allocation2]   ;;  %s16_s14 = int_to_ptr.hbm [resolvable:$true] %s15_s14 }
   0x3   :  { %s17_s16 = sshll.u32 %s218_s15, 4  ;;  %s28_s19 = sshll.u32 %s265_s1, 4  ;;  %s18_s16 = int_to_ptr.vmem [resolvable:$true] %s17_s16  ;;  %s29_s19 = int_to_ptr.hbm [resolvable:$true] %s28_s19 }
   0x4   :  { %s219_s20 = smov 64   ;;  %s220_s21 = smov 4  }
   0x5   :  { %23 = dma.hbm_to_vmem [thread:$0]  %s16_s14, 128, %s18_s16, [#allocation3], %s219_s20, %s219_s20, %s220_s21  }
   0x6   :  { %s221_s22 = smov [#allocation5]  }
   0x7   :  { %s30_s23 = sshll.u32 %s221_s22, 4  ;;  %s31_s23 = int_to_ptr.vmem [resolvable:$true] %s30_s23 }
   0x8   :  { %36 = dma.hbm_to_vmem [thread:$0]  %s29_s19, 256, %s31_s23, [#allocation6], %s219_s20, %s219_s20, %s220_s21  }
   0x9   :  { %212 = dma.done.wait [#allocation3], 128  }
   0xa   :  { %213 = vsyncadd [#allocation3], 4294967168 }
   0xb   :  { %214 = dma.done.wait [#allocation6], 256  }
   0xc   :  { %215 = vsyncadd [#allocation6], 4294967040  ;;  %v133_v0 = vld [vmem:[#allocation5 + $0x8] sm:$0xff]  ;;  %v132_v1 = vld [vmem:[#allocation5] sm:$0xff]  ;;  %vm75_vm0 = vcmask 261120   ;;  %vm95_vm1 = vcmask 781312  }
   0xd   :  { %85 = vmatpush.bf16.msra.mxu0 %v133_v0  ;;  %v131_v2 = vld [vmem:[#allocation2] sm:$0xff]  ;;  %s222_s24 = smov [#allocation7]   ;;  %s104_s28 = sshll.u32 %s267_s3, 4  ;;  %s105_s28 = int_to_ptr.hbm [resolvable:$true] %s104_s28 }
   0xe   :  { %v139_v3 = vld [vmem:[%s266_s2] ss:$0 sm:$0xff]  ;;  %s102_s25 = sshll.u32 %s222_s24, 4  ;;  %s103_s25 = int_to_ptr.vmem [resolvable:$true] %s102_s25 }
  0x11   :  { %86 = vmatpush.bf16.msra.mxu0 %v132_v1 }
  0x14   :  { %130 = vmatmul.msk.bf16.vlgmr.msra.gmra.mxu0 %vm75_vm0, %v131_v2 }
  0x91   :  { %v88_v4 = vpop.f32.mrf.mxu0 }
  0x92   :  { %v89_v5 = vadd.f32 %v139_v3, %v88_v4 }
  0x94   :  { %v93_v6 = vpack.c.bf16 %v89_v5, %v89_v5 }
  0x96   :  { %96 = vst.msk [vmem:[#allocation7] sm:$0xf] %vm95_vm1, %v93_v6 }
  0x99   :  { %v90_v7 = vpop.f32.mrf.mxu0 }
  0x9a   :  { %v91_v8 = vadd.f32 %v139_v3, %v90_v7 }
  0x9c   :  { %v94_v9 = vpack.c.bf16 %v91_v8, %v91_v8 }
  0x9e   :  { %97 = vst.msk [vmem:[#allocation7 + $0x4] sm:$0xf] %vm95_vm1, %v94_v9 }
  0x9f   :  { %110 = dma.vmem_to_hbm [thread:$0]  %s103_s25, 128, %s105_s28, [#allocation4], %s219_s20, %s219_s20, %s220_s21  }
  0xa0   :  { %216 = dma.done.wait [#allocation4], 128  }
  0xa1   :  { %217 = vsyncadd [#allocation4], 4294967168 }
  0xa2   :  { %115 = vsyncpa [#allocation3], 1 }
  0xa3   :  { %116 = vsyncpa [#allocation6], 1 }
  0xa4   :  { %117 = vsyncpa [#allocation4], 1 }

</bundles_post_ra>
